<compile_context>
chip_gen: v7x
topology: tpu7x:2x2x1
jax: 0.10.0
libtpu: 0.0.40
codegen_flags: <defaults>
</compile_context>

<pallas_src>
import functools

import jax
import jax.numpy as jnp
from jax.experimental import pallas as pl
from jax.experimental.pallas import tpu as pltpu

K = 7            # conv kernel size along the sequence
PAD = 3          # "same" padding
HALO = 2 * PAD   # rows of conv1 activations needed beyond the tile for conv2
C_IN = 1024
C_MID = 32
C_OUT = 3


def _tap_sum(y, n_rows, width):
    """out[l] = sum_k y[l + k, k*width:(k+1)*width]   (7 shifted adds, small)."""
    acc = y[0:n_rows, 0:width]
    for k in range(1, K):
        acc = acc + y[k:k + n_rows, k * width:(k + 1) * width]
    return acc


def convnet_kernel(x_ref, xh_ref, w1c_ref, b1_ref, w2c_ref, b2_ref, out_ref,
                   *, lt, seq_len):
    # x_ref  : (1, lt, 1024) in x.dtype -- this sequence tile
    # xh_ref : (1, 1, 12, 1024)         -- 6 rows before + 6 rows after the tile
    #                                      (zero-filled at the sequence ends)
    # w1c_ref: (1024, 224) bf16         -- conv1 weights, taps concatenated on cols
    # b1_ref : (1, 32) f32
    # w2c_ref: (32, 21) bf16            -- conv2 weights, taps concatenated on cols
    # b2_ref : (1, 3) f32
    # out_ref: (1, lt, 3) f32
    w1c = w1c_ref[...]

    # Cast to bf16 in VMEM (cheap VPU work, hidden under the matmul) instead of
    # paying an extra HBM pass in the wrapper.
    x_bf = x_ref[0].astype(jnp.bfloat16)           # (lt, 1024)
    xh_bf = xh_ref[0, 0].astype(jnp.bfloat16)      # (12, 1024)

    # ---- Conv1 (1024 -> 32, k=7) as one wide MXU matmul (tap-as-columns) ----
    # y[i, k*32:(k+1)*32] = x_row_i @ w1[k]; conv1 row r = sum_k y[r+k-3, k-block]
    y_main = jnp.dot(x_bf, w1c, preferred_element_type=jnp.float32)    # (lt, 224)
    y_halo = jnp.dot(xh_bf, w1c, preferred_element_type=jnp.float32)   # (12, 224)
    # rows of yp correspond to sequence rows [base-6, base+lt+6)
    yp = jnp.concatenate([y_halo[:HALO], y_main, y_halo[HALO:]], axis=0)  # (lt+12, 224)

    # conv1 output (+bias, ReLU) for rows [base-3, base+lt+3): includes the
    # halo rows conv2 needs.
    h = _tap_sum(yp, lt + HALO, C_MID) + b1_ref[...]                   # (lt+6, 32)
    h = jnp.maximum(h, 0.0)                                            # ReLU
    # TODO(synk): Dropout(0.25) is identity in eval mode; not applied here.

    # Conv2 zero-pads its *input* (the ReLU output): rows outside [0, L) must be
    # exactly 0 (not relu(b1)).
    base = pl.program_id(1) * lt
    row = base - PAD + jax.lax.broadcasted_iota(jnp.int32, (lt + HALO, 1), 0)
    h = jnp.where((row >= 0) & (row < seq_len), h, 0.0)

    # ---- Conv2 (32 -> 3, k=7), tap-as-columns on the small activation tile ----
    z = jnp.dot(h.astype(jnp.bfloat16), w2c_ref[...],
                preferred_element_type=jnp.float32)                    # (lt+6, 21)
    # output last dim is 3 (masked store) -- output bytes are negligible.
    out_ref[0] = _tap_sum(z, lt, C_OUT) + b2_ref[...]


def convnet_forward(x, w1, b1, w2, b2, *, lt=None):
    """x: (B, L, 1024) -> (B, L, 3) float32.

    w1: (7, 1024, 32), b1: (32,), w2: (7, 32, 3), b2: (3,)
    (PyTorch Conv2d weight (Cout, Cin, 7, 1) corresponds to w[k, cin, cout].)
    """
    B, L, cin = x.shape
    assert cin == C_IN
    if lt is None:                       # pick the biggest sequence tile that divides L
        lt = L
        for cand in (512, 256, 128, 64, 32, 16, 8):
            if L % cand == 0:
                lt = cand
                break
    assert L % lt == 0, "sequence tile must divide L"
    assert lt == L or lt % 8 == 0, "tile must be a multiple of 8 sublanes"
    n_tiles = L // lt
    if n_tiles > 1:
        assert lt >= HALO, "tile must cover the 6-row conv halo"

    # tap-as-columns weights: w1c[:, k*32:(k+1)*32] = w1[k], w2c[:, k*3:(k+1)*3] = w2[k]
    w1c = jnp.transpose(w1, (1, 0, 2)).reshape(C_IN, K * C_MID).astype(jnp.bfloat16)
    w2c = jnp.transpose(w2, (1, 0, 2)).reshape(C_MID, K * C_OUT).astype(jnp.bfloat16)
    b1_2d = b1.reshape(1, C_MID).astype(jnp.float32)
    b2_2d = b2.reshape(1, C_OUT).astype(jnp.float32)

    # Tiny boundary-halo array: for tile t, 6 rows before and 6 rows after it
    # (zeros at the sequence ends) -> per-tile blocks need no overlap.
    if n_tiles > 1:
        xr = x.reshape(B, n_tiles, lt, C_IN)
        zrow = jnp.zeros((B, 1, HALO, C_IN), x.dtype)
        halo_lo = jnp.concatenate([zrow, xr[:, :-1, lt - HALO:, :]], axis=1)
        halo_hi = jnp.concatenate([xr[:, 1:, :HALO, :], zrow], axis=1)
        x_halo = jnp.concatenate([halo_lo, halo_hi], axis=2)      # (B, nT, 12, C_IN)
    else:
        x_halo = jnp.zeros((B, 1, 2 * HALO, C_IN), x.dtype)

    kernel = functools.partial(convnet_kernel, lt=lt, seq_len=L)

    return pl.pallas_call(
        kernel,
        out_shape=jax.ShapeDtypeStruct((B, L, C_OUT), jnp.float32),
        grid_spec=pltpu.PrefetchScalarGridSpec(
            num_scalar_prefetch=0,
            grid=(B, n_tiles),
            in_specs=[
                pl.BlockSpec((1, lt, C_IN), lambda b, t: (b, t, 0)),
                pl.BlockSpec((1, 1, 2 * HALO, C_IN), lambda b, t: (b, t, 0, 0)),
                pl.BlockSpec((C_IN, K * C_MID), lambda b, t: (0, 0)),
                pl.BlockSpec((1, C_MID), lambda b, t: (0, 0)),
                pl.BlockSpec((C_MID, K * C_OUT), lambda b, t: (0, 0)),
                pl.BlockSpec((1, C_OUT), lambda b, t: (0, 0)),
            ],
            out_specs=pl.BlockSpec((1, lt, C_OUT), lambda b, t: (b, t, 0)),
        ),
        compiler_params=pltpu.CompilerParams(
            dimension_semantics=("parallel", "parallel"),
            vmem_limit_bytes=32 * 1024 * 1024,
        ),
    )(x, x_halo, w1c, b1_2d, w2c, b2_2d)


def _reference(x, w1, b1, w2, b2):
    """Pure-jnp reference (same bf16 input rounding, fp32 accumulation)."""
    f32 = jnp.float32
    B, L, _ = x.shape
    xb = x.astype(jnp.bfloat16).astype(f32)
    w1b = w1.astype(jnp.bfloat16).astype(f32)
    w2b = w2.astype(jnp.bfloat16).astype(f32)
    xp = jnp.pad(xb, ((0, 0), (PAD, PAD), (0, 0)))
    h = jnp.zeros((B, L, C_MID), f32)
    for k in range(K):
        h += jnp.einsum("blc,cd->bld", xp[:, k:k + L, :], w1b[k])
    h = jnp.maximum(h + b1, 0.0)
    hb = h.astype(jnp.bfloat16).astype(f32)
    hp = jnp.pad(hb, ((0, 0), (PAD, PAD), (0, 0)))
    o = jnp.zeros((B, L, C_OUT), f32)
    for k in range(K):
        o += jnp.einsum("blc,cd->bld", hp[:, k:k + L, :], w2b[k])
    return o + b2


if __name__ == "__main__":
    key = jax.random.PRNGKey(0)
    k_x, k_w1, k_b1, k_w2, k_b2 = jax.random.split(key, 5)

    B, L = 2, 16
    x = jax.random.normal(k_x, (B, L, C_IN), jnp.float32)

    # Deterministic parameters (PyTorch Conv2d weight (Cout, Cin, 7, 1) stored
    # here as (7, Cin, Cout)).
    w1 = jax.random.normal(k_w1, (K, C_IN, C_MID), jnp.float32) * 0.02
    b1 = jax.random.normal(k_b1, (C_MID,), jnp.float32) * 0.02
    w2 = jax.random.normal(k_w2, (K, C_MID, C_OUT), jnp.float32) * 0.1
    b2 = jax.random.normal(k_b2, (C_OUT,), jnp.float32) * 0.1

    # lt=8 -> 2 sequence tiles per batch element: exercises the halo path too.
    out = convnet_forward(x, w1, b1, w2, b2, lt=8)
    out = jax.block_until_ready(out)

    ref = _reference(x, w1, b1, w2, b2)
    assert out.shape == (B, L, C_OUT)
    err = float(jnp.max(jnp.abs(out - ref)))
    assert jnp.allclose(out, ref, atol=1e-2, rtol=1e-2), f"max abs err {err}"

    print("KERNEL_OK")
</pallas_src>

<mosaic_0001>
module attributes {stable_mosaic.version = 11 : i64} {
  func.func @convnet_kernel(%arg0: i32, %arg1: i32, %arg2: memref<1x8x1024xf32, #tpu.memory_space<vmem>>, %arg3: memref<1x1x12x1024xf32, #tpu.memory_space<vmem>>, %arg4: memref<1024x224xbf16, #tpu.memory_space<vmem>>, %arg5: memref<1x32xf32, #tpu.memory_space<vmem>>, %arg6: memref<32x21xbf16, #tpu.memory_space<vmem>>, %arg7: memref<1x3xf32, #tpu.memory_space<vmem>>, %arg8: memref<1x8x3xf32, #tpu.memory_space<vmem>>) attributes {dimension_semantics = [#tpu.dimension_semantics<parallel>, #tpu.dimension_semantics<parallel>], iteration_bounds = array<i64: 2, 2>, scalar_prefetch = 0 : i64, scratch_operands = 0 : i64, tpu.core_type = #tpu.core_type<tc>, window_params = [{transform_indices = @transform_0, window_bounds = array<i64: 1, 8, 1024>}, {transform_indices = @transform_1, window_bounds = array<i64: 1, 1, 12, 1024>}, {pipeline_mode = #tpu.pipeline_mode<synchronous>, transform_indices = @transform_2, window_bounds = array<i64: 1024, 224>}, {pipeline_mode = #tpu.pipeline_mode<synchronous>, transform_indices = @transform_3, window_bounds = array<i64: 1, 32>}, {pipeline_mode = #tpu.pipeline_mode<synchronous>, transform_indices = @transform_4, window_bounds = array<i64: 32, 21>}, {pipeline_mode = #tpu.pipeline_mode<synchronous>, transform_indices = @transform_5, window_bounds = array<i64: 1, 3>}, {transform_indices = @transform_6, window_bounds = array<i64: 1, 8, 3>}]} {
    %c0 = arith.constant 0 : index
    %c0_0 = arith.constant 0 : index
    %0 = vector.load %arg4[%c0, %c0_0] : memref<1024x224xbf16, #tpu.memory_space<vmem>>, vector<1024x224xbf16>
    %c0_1 = arith.constant 0 : index
    %c0_2 = arith.constant 0 : index
    %c0_3 = arith.constant 0 : index
    %1 = vector.load %arg2[%c0_1, %c0_2, %c0_3] : memref<1x8x1024xf32, #tpu.memory_space<vmem>>, vector<1x8x1024xf32>
    %2 = vector.shape_cast %1 : vector<1x8x1024xf32> to vector<8x1024xf32>
    %3 = arith.truncf %2 : vector<8x1024xf32> to vector<8x1024xbf16>
    %c0_4 = arith.constant 0 : index
    %c0_5 = arith.constant 0 : index
    %c0_6 = arith.constant 0 : index
    %c0_7 = arith.constant 0 : index
    %4 = vector.load %arg3[%c0_4, %c0_5, %c0_6, %c0_7] : memref<1x1x12x1024xf32, #tpu.memory_space<vmem>>, vector<1x1x12x1024xf32>
    %5 = vector.shape_cast %4 : vector<1x1x12x1024xf32> to vector<12x1024xf32>
    %6 = arith.truncf %5 : vector<12x1024xf32> to vector<12x1024xbf16>
    %cst = arith.constant dense<0.000000e+00> : vector<8x224xf32>
    %7 = tpu.matmul %3, %0, %cst {dimension_numbers = #tpu.dot_dimension_numbers<[1], [0], [0], [1], [0, 0, 1, 1], [], []>} : vector<8x1024xbf16>, vector<1024x224xbf16>, vector<8x224xf32> -> vector<8x224xf32>
    %cst_8 = arith.constant dense<0.000000e+00> : vector<12x224xf32>
    %8 = tpu.matmul %6, %0, %cst_8 {dimension_numbers = #tpu.dot_dimension_numbers<[1], [0], [0], [1], [0, 0, 1, 1], [], []>} : vector<12x1024xbf16>, vector<1024x224xbf16>, vector<12x224xf32> -> vector<12x224xf32>
    %9 = vector.extract_strided_slice %8 {offsets = [0, 0], sizes = [6, 224], strides = [1, 1]} : vector<12x224xf32> to vector<6x224xf32>
    %10 = vector.extract_strided_slice %8 {offsets = [6, 0], sizes = [6, 224], strides = [1, 1]} : vector<12x224xf32> to vector<6x224xf32>
    %11 = tpu.concatenate %9, %7, %10 in 0 : vector<6x224xf32>, vector<8x224xf32>, vector<6x224xf32> -> vector<20x224xf32>
    %12 = vector.extract_strided_slice %11 {offsets = [0, 0], sizes = [14, 32], strides = [1, 1]} : vector<20x224xf32> to vector<14x32xf32>
    %13 = vector.extract_strided_slice %11 {offsets = [1, 32], sizes = [14, 32], strides = [1, 1]} : vector<20x224xf32> to vector<14x32xf32>
    %14 = arith.addf %12, %13 : vector<14x32xf32>
    %15 = vector.extract_strided_slice %11 {offsets = [2, 64], sizes = [14, 32], strides = [1, 1]} : vector<20x224xf32> to vector<14x32xf32>
    %16 = arith.addf %14, %15 : vector<14x32xf32>
    %17 = vector.extract_strided_slice %11 {offsets = [3, 96], sizes = [14, 32], strides = [1, 1]} : vector<20x224xf32> to vector<14x32xf32>
    %18 = arith.addf %16, %17 : vector<14x32xf32>
    %19 = vector.extract_strided_slice %11 {offsets = [4, 128], sizes = [14, 32], strides = [1, 1]} : vector<20x224xf32> to vector<14x32xf32>
    %20 = arith.addf %18, %19 : vector<14x32xf32>
    %21 = vector.extract_strided_slice %11 {offsets = [5, 160], sizes = [14, 32], strides = [1, 1]} : vector<20x224xf32> to vector<14x32xf32>
    %22 = arith.addf %20, %21 : vector<14x32xf32>
    %23 = vector.extract_strided_slice %11 {offsets = [6, 192], sizes = [14, 32], strides = [1, 1]} : vector<20x224xf32> to vector<14x32xf32>
    %24 = arith.addf %22, %23 : vector<14x32xf32>
    %c0_9 = arith.constant 0 : index
    %c0_10 = arith.constant 0 : index
    %25 = vector.load %arg5[%c0_9, %c0_10] : memref<1x32xf32, #tpu.memory_space<vmem>>, vector<1x32xf32>
    %26 = vector.broadcast %25 : vector<1x32xf32> to vector<14x32xf32>
    %27 = arith.addf %24, %26 : vector<14x32xf32>
    %cst_11 = arith.constant 0.000000e+00 : f32
    %28 = vector.broadcast %cst_11 : f32 to vector<14x32xf32>
    %29 = arith.maximumf %27, %28 : vector<14x32xf32>
    %c8_i32 = arith.constant 8 : i32
    %30 = arith.muli %arg1, %c8_i32 : i32
    %c3_i32 = arith.constant 3 : i32
    %31 = arith.subi %30, %c3_i32 : i32
    %32 = tpu.iota {dimensions = array<i32: 0>} : vector<14x1xi32>
    %33 = vector.broadcast %31 : i32 to vector<14x1xi32>
    %34 = arith.addi %33, %32 : vector<14x1xi32>
    %c0_i32 = arith.constant 0 : i32
    %35 = vector.broadcast %c0_i32 : i32 to vector<14x1xi32>
    %36 = arith.cmpi sge, %34, %35 : vector<14x1xi32>
    %c16_i32 = arith.constant 16 : i32
    %37 = vector.broadcast %c16_i32 : i32 to vector<14x1xi32>
    %38 = arith.cmpi slt, %34, %37 : vector<14x1xi32>
    %39 = arith.andi %36, %38 : vector<14x1xi1>
    %cst_12 = arith.constant 0.000000e+00 : f32
    %40 = vector.shape_cast %39 : vector<14x1xi1> to vector<14x1xi1>
    %41 = vector.broadcast %40 : vector<14x1xi1> to vector<14x32xi1>
    %42 = vector.broadcast %cst_12 : f32 to vector<14x32xf32>
    %43 = arith.select %41, %29, %42 : vector<14x32xi1>, vector<14x32xf32>
    %44 = arith.truncf %43 : vector<14x32xf32> to vector<14x32xbf16>
    %c0_13 = arith.constant 0 : index
    %c0_14 = arith.constant 0 : index
    %45 = vector.load %arg6[%c0_13, %c0_14] : memref<32x21xbf16, #tpu.memory_space<vmem>>, vector<32x21xbf16>
    %cst_15 = arith.constant dense<0.000000e+00> : vector<14x21xf32>
    %46 = tpu.matmul %44, %45, %cst_15 {dimension_numbers = #tpu.dot_dimension_numbers<[1], [0], [0], [1], [0, 0, 1, 1], [], []>} : vector<14x32xbf16>, vector<32x21xbf16>, vector<14x21xf32> -> vector<14x21xf32>
    %47 = vector.extract_strided_slice %46 {offsets = [0, 0], sizes = [8, 3], strides = [1, 1]} : vector<14x21xf32> to vector<8x3xf32>
    %48 = vector.extract_strided_slice %46 {offsets = [1, 3], sizes = [8, 3], strides = [1, 1]} : vector<14x21xf32> to vector<8x3xf32>
    %49 = arith.addf %47, %48 : vector<8x3xf32>
    %50 = vector.extract_strided_slice %46 {offsets = [2, 6], sizes = [8, 3], strides = [1, 1]} : vector<14x21xf32> to vector<8x3xf32>
    %51 = arith.addf %49, %50 : vector<8x3xf32>
    %52 = vector.extract_strided_slice %46 {offsets = [3, 9], sizes = [8, 3], strides = [1, 1]} : vector<14x21xf32> to vector<8x3xf32>
    %53 = arith.addf %51, %52 : vector<8x3xf32>
    %54 = vector.extract_strided_slice %46 {offsets = [4, 12], sizes = [8, 3], strides = [1, 1]} : vector<14x21xf32> to vector<8x3xf32>
    %55 = arith.addf %53, %54 : vector<8x3xf32>
    %56 = vector.extract_strided_slice %46 {offsets = [5, 15], sizes = [8, 3], strides = [1, 1]} : vector<14x21xf32> to vector<8x3xf32>
    %57 = arith.addf %55, %56 : vector<8x3xf32>
    %58 = vector.extract_strided_slice %46 {offsets = [6, 18], sizes = [8, 3], strides = [1, 1]} : vector<14x21xf32> to vector<8x3xf32>
    %59 = arith.addf %57, %58 : vector<8x3xf32>
    %c0_16 = arith.constant 0 : index
    %c0_17 = arith.constant 0 : index
    %60 = vector.load %arg7[%c0_16, %c0_17] : memref<1x3xf32, #tpu.memory_space<vmem>>, vector<1x3xf32>
    %61 = vector.broadcast %60 : vector<1x3xf32> to vector<8x3xf32>
    %62 = arith.addf %59, %61 : vector<8x3xf32>
    %c0_18 = arith.constant 0 : index
    %c0_19 = arith.constant 0 : index
    %c0_20 = arith.constant 0 : index
    %63 = vector.load %arg8[%c0_18, %c0_19, %c0_20] : memref<1x8x3xf32, #tpu.memory_space<vmem>>, vector<1x8x3xf32>
    %64 = vector.shape_cast %63 : vector<1x8x3xf32> to vector<8x3xf32>
    %65 = vector.shape_cast %62 : vector<8x3xf32> to vector<1x8x3xf32>
    tpu.vector_store %arg8[%c0_18, %c0_19, %c0_20], %65 {strides = array<i32>} : memref<1x8x3xf32, #tpu.memory_space<vmem>>, vector<1x8x3xf32>,
    return
  }
  func.func @transform_0(%arg0: i32, %arg1: i32) -> (i32, i32, i32) {
    %c0_i32 = arith.constant 0 : i32
    %c0_i32_0 = arith.constant 0 : i32
    return %arg0, %arg1, %c0_i32 : i32, i32, i32
  }
  func.func @transform_1(%arg0: i32, %arg1: i32) -> (i32, i32, i32, i32) {
    %c0_i32 = arith.constant 0 : i32
    %c0_i32_0 = arith.constant 0 : i32
    %c0_i32_1 = arith.constant 0 : i32
    return %arg0, %arg1, %c0_i32, %c0_i32_0 : i32, i32, i32, i32
  }
  func.func @transform_2(%arg0: i32, %arg1: i32) -> (i32, i32) {
    %c0_i32 = arith.constant 0 : i32
    %c0_i32_0 = arith.constant 0 : i32
    %c0_i32_1 = arith.constant 0 : i32
    return %c0_i32, %c0_i32_0 : i32, i32
  }
  func.func @transform_3(%arg0: i32, %arg1: i32) -> (i32, i32) {
    %c0_i32 = arith.constant 0 : i32
    %c0_i32_0 = arith.constant 0 : i32
    %c0_i32_1 = arith.constant 0 : i32
    return %c0_i32, %c0_i32_0 : i32, i32
  }
  func.func @transform_4(%arg0: i32, %arg1: i32) -> (i32, i32) {
    %c0_i32 = arith.constant 0 : i32
    %c0_i32_0 = arith.constant 0 : i32
    %c0_i32_1 = arith.constant 0 : i32
    return %c0_i32, %c0_i32_0 : i32, i32
  }
  func.func @transform_5(%arg0: i32, %arg1: i32) -> (i32, i32) {
    %c0_i32 = arith.constant 0 : i32
    %c0_i32_0 = arith.constant 0 : i32
    %c0_i32_1 = arith.constant 0 : i32
    return %c0_i32, %c0_i32_0 : i32, i32
  }
  func.func @transform_6(%arg0: i32, %arg1: i32) -> (i32, i32, i32) {
    %c0_i32 = arith.constant 0 : i32
    %c0_i32_0 = arith.constant 0 : i32
    return %arg0, %arg1, %c0_i32 : i32, i32, i32
  }
}

</mosaic_0001>

<bundles_post_ra>
// kernel: tpu_custom_call.1
= control target key start
LH: loop header
LB: loop body
LE: loop exit
PB: predicated region body
PF: predicated region fallthrough
CT: control target
= control target key end

     0   :  { %s2330_s21 = smov 0   ;;  %s2332_s22 = smov 0   ;;  %s2853_s0 = inlined_call_operand.vmem [shape: f32[2,16,1024], index: 0, kind: input, shape index: {}]   ;;  %s2854_s1 = inlined_call_operand.vmem [shape: f32[2,2,12,1024], index: 1, kind: input, shape index: {}]   ;;  %s2855_s2 = inlined_call_operand.vmem [shape: bf16[1024,224], index: 2, kind: input, shape index: {}]   ;;  %s2856_s3 = inlined_call_operand.vmem [shape: f32[1,32], index: 3, kind: input, shape index: {}]   ;;  %s2857_s4 = inlined_call_operand.vmem [shape: bf16[32,21], index: 4, kind: input, shape index: {}]   ;;  %s2858_s5 = inlined_call_operand.vmem [shape: f32[1,3], index: 5, kind: input, shape index: {}]   ;;  %s2859_s6 = inlined_call_operand.vmem [shape: f32[2,16,3], index: 6, kind: output, shape index: {}]  }
   0x1   :  { %s2334_s23 = smov 0   ;;  %s2336_s24 = smov 0  }
   0x2   :  { %s2338_s25 = smov 0  }
   0x3 LB: > { %s25_s26 = sadd.s32 1, %s2274_s23  ;;  %s28_s27 = sadd.s32 1, %s2278_s24  ;;  %s2282_s25 = sphi %s2338_s25, %s16_s25   ;;  %s2278_s24 = sphi %s2336_s24, %s2863_s24   ;;  %s2274_s23 = sphi %s2334_s23, %s2862_s23   ;;  %s2270_s22 = sphi %s2332_s22, %s2861_s22   ;;  %s2266_s21 = sphi %s2330_s21, %s2860_s21  }
   0x4   : > { %p26_p0 = scmp.ge.s32.totalorder %s25_s26, 2  ;;  %p1818_p1 = scmp.ge.s32.totalorder %s2282_s25, 1 }
   0x5   : > { %p248_p2 = scmp.lt.s32.totalorder %s2282_s25, 5 }
   0x6   : > { %s2865_s26 = smov (%p26_p0, %s25_s26), 0  ;;  %s2867_s27 = smov (!%p26_p0, %s28_s27), %s2278_s24 }
   0x7   : > { %p249_p3 = pnand %p1818_p1, %p248_p2  ;;  %p30_p4 = scmp.ge.s32.totalorder %s2867_s27, 2 }
   0x8   : > { %v2050_v0 = vld [vmem:[%s2855_s2 + $0x4] ss:$8 sps:$4 sm:$0xff] (!%p249_p3)   ;;  %p294_p5 = scmp.lt.s32.totalorder (!%p249_p3), %s2270_s22, 1  ;;  %v2052_v1 = vld [vmem:[%s2855_s2] ss:$8 sps:$4 sm:$0xff] (!%p249_p3)   ;;  %p296_p6 = scmp.lt.s32.totalorder (!%p249_p3), %s2266_s21, 1 }
   0x9   : > { %s2869_s27 = smov (%p30_p4, %s2867_s27), 0  ;;  %252 = sbr.rel (%p249_p3) target bundleno = 973 (0x3cd), region = 44 }
   0xa   : > { %1129 = vmatprep.subr.bf16.mxu0 (!%p249_p3), %v2050_v0  ;;  %1293 = vmatprep.subr.bf16.mxu1 (!%p249_p3), %v2050_v0  ;;  %v2053_v2 = vld [vmem:[%s2855_s2 + $0x14] ss:$8 sps:$4 sm:$0xff] (!%p249_p3)   ;;  %v2055_v3 = vld [vmem:[%s2855_s2 + $0x10] ss:$8 sps:$4 sm:$0xff] (!%p249_p3)   ;;  %v2056_v4 = vld [vmem:[%s2855_s2 + $0x24] ss:$8 sps:$4 sm:$0xff] (!%p249_p3)  }
   0xb   : > { %1130 = vmatpush1.bf16.msra.mxu0 (!%p249_p3), %v2052_v1  ;;  %1294 = vmatpush1.bf16.msra.mxu1 (!%p249_p3), %v2052_v1  ;;  %v2058_v5 = vld [vmem:[%s2855_s2 + $0x20] ss:$8 sps:$4 sm:$0xff] (!%p249_p3)   ;;  %v2059_v6 = vld [vmem:[%s2855_s2 + $0x34] ss:$8 sps:$4 sm:$0xff] (!%p249_p3)   ;;  %v2061_v7 = vld [vmem:[%s2855_s2 + $0x30] ss:$8 sps:$4 sm:$0xff] (!%p249_p3)  }
   0xc   : > { %1131 = vmatprep.subr.bf16.mxu0 (!%p249_p3), %v2053_v2  ;;  %1295 = vmatprep.subr.bf16.mxu1 (!%p249_p3), %v2053_v2  ;;  %v2062_v8 = vld [vmem:[%s2855_s2 + $0x44] ss:$8 sps:$4 sm:$0xff] (!%p249_p3)   ;;  %v2064_v9 = vld [vmem:[%s2855_s2 + $0x40] ss:$8 sps:$4 sm:$0xff] (!%p249_p3)   ;;  %v2065_v10 = vld [vmem:[%s2855_s2 + $0x54] ss:$8 sps:$4 sm:$0xff] (!%p249_p3)  }
   0xd   : > { %v2067_v11 = vld [vmem:[%s2855_s2 + $0x50] ss:$8 sps:$4 sm:$0xff] (!%p249_p3)   ;;  %v2068_v12 = vld [vmem:[%s2855_s2 + $0x64] ss:$8 sps:$4 sm:$0xff] (!%p249_p3)   ;;  %v2070_v15 = vld [vmem:[%s2855_s2 + $0x60] ss:$8 sps:$4 sm:$0xff] (!%p249_p3)  }
   0xe   : > { %v2071_v18 = vld [vmem:[%s2855_s2 + $0x74] ss:$8 sps:$4 sm:$0xff] (!%p249_p3)   ;;  %v2073_v20 = vld [vmem:[%s2855_s2 + $0x70] ss:$8 sps:$4 sm:$0xff] (!%p249_p3)   ;;  %v2074_v21 = vld [vmem:[%s2855_s2 + $0x84] ss:$8 sps:$4 sm:$0xff] (!%p249_p3)  }
   0xf   : > { %1132 = vmatpush1.bf16.msra.mxu0 (!%p249_p3), %v2055_v3  ;;  %1296 = vmatpush1.bf16.msra.mxu1 (!%p249_p3), %v2055_v3  ;;  %v2076_v22 = vld [vmem:[%s2855_s2 + $0x80] ss:$8 sps:$4 sm:$0xff] (!%p249_p3)   ;;  %v2077_v23 = vld [vmem:[%s2855_s2 + $0x94] ss:$8 sps:$4 sm:$0xff] (!%p249_p3)   ;;  %v2079_v24 = vld [vmem:[%s2855_s2 + $0x90] ss:$8 sps:$4 sm:$0xff] (!%p249_p3)  }
  0x10   : > { %s2871_s22 = smov (!%p294_p5, %s2270_s22), 1  ;;  %1133 = vmatprep.subr.bf16.mxu0 %v2056_v4  ;;  %1297 = vmatprep.subr.bf16.mxu1 %v2056_v4  ;;  %v2080_v25 = vld [vmem:[%s2855_s2 + $0xa4] ss:$8 sps:$4 sm:$0xff]   ;;  %v2082_v26 = vld [vmem:[%s2855_s2 + $0xa0] ss:$8 sps:$4 sm:$0xff]   ;;  %vm1471_vm0 = vcmask 1045504  }
  0x11   : > { %s2381_s14 = scalar_select %p296_p6, %s2266_s21, 1  ;;  %v2083_v27 = vld [vmem:[%s2855_s2 + $0xb4] ss:$8 sps:$4 sm:$0xff]   ;;  %v2085_v28 = vld [vmem:[%s2855_s2 + $0xb0] ss:$8 sps:$4 sm:$0xff]   ;;  %vm1529_vm1 = vcmask 1042432  }
  0x12   : > { %s1820_s20 = sshll.u32 %s2871_s22, 4  ;;  %s1823_s7 = sshll.u32 %s2871_s22, 5  ;;  %v2086_v29 = vld [vmem:[%s2855_s2 + $0xc4] ss:$8 sps:$4 sm:$0xff]   ;;  %v2088_v30 = vld [vmem:[%s2855_s2 + $0xc0] ss:$8 sps:$4 sm:$0xff]  }
  0x13   : > { %s1819_s19 = sshll.u32 %s2381_s14, 3  ;;  %1134 = vmatpush1.bf16.msra.mxu0 %v2058_v5  ;;  %1298 = vmatpush1.bf16.msra.mxu1 %v2058_v5  ;;  %s1822_s30 = sshll.u32 %s2381_s14, 4  ;;  %v2089_v31 = vld [vmem:[%s2855_s2 + $0xd4] ss:$8 sps:$4 sm:$0xff]   ;;  %v2091_v32 = vld [vmem:[%s2855_s2 + $0xd0] ss:$8 sps:$4 sm:$0xff]  }
  0x14   : > { %1135 = vmatprep.subr.bf16.mxu0 %v2059_v6  ;;  %1299 = vmatprep.subr.bf16.mxu1 %v2059_v6  ;;  %s300_s10 = sadd.s32 %s1820_s20, %s1819_s19  ;;  %s309_s11 = sadd.s32 %s1823_s7, %s1822_s30  ;;  %v2092_v33 = vld [vmem:[%s2855_s2 + $0xe4] ss:$8 sps:$4 sm:$0xff]   ;;  %v2094_v34 = vld [vmem:[%s2855_s2 + $0xe0] ss:$8 sps:$4 sm:$0xff]   ;;  %v2095_v35 = vld [vmem:[%s2855_s2 + $0xf4] ss:$8 sps:$4 sm:$0xff]  }
  0x15   : > { %s1821_s15 = sshll.u32 %s300_s10, 3  ;;  %s1824_s18 = sshll.u32 %s309_s11, 3  ;;  %v2097_v36 = vld [vmem:[%s2855_s2 + $0xf0] ss:$8 sps:$4 sm:$0xff]   ;;  %v2100_v40 = vld [vmem:[%s2855_s2 + $0x104] ss:$8 sps:$4 sm:$0xff]  }
  0x16   : > { %s2408_s8 = scalar_lea.vmem %s2853_s0, %s1821_s15  ;;  %s2419_s11 = scalar_lea.vmem %s2854_s1, %s1824_s18  ;;  %v2098_v46 = vld [vmem:[%s2855_s2 + $0x100] ss:$8 sps:$4 sm:$0xff]   ;;  %v2103_v47 = vld [vmem:[%s2855_s2 + $0x114] ss:$8 sps:$4 sm:$0xff]   ;;  %v2101_v50 = vld [vmem:[%s2855_s2 + $0x110] ss:$8 sps:$4 sm:$0xff]  }
  0x17   : > { %1136 = vmatpush1.bf16.msra.mxu0 %v2061_v7  ;;  %1300 = vmatpush1.bf16.msra.mxu1 %v2061_v7  ;;  %v450_v13 = vld [vmem:[%s2408_s8 + $0x8] sm:$0xff]  ;;  %v449_v37 = vld [vmem:[%s2408_s8] sm:$0xff]  ;;  %v452_v41 = vld [vmem:[%s2408_s8 + $0x18] sm:$0xff]  ;;  %vm1543_vm2 = vcmask 1041408   ;;  %vm1519_vm3 = vcmask 1043456   ;;  %vm1478_vm4 = vcmask 1046528  }
  0x18   : > { %1137 = vmatprep.subr.bf16.mxu0 %v2062_v8  ;;  %1301 = vmatprep.subr.bf16.mxu1 %v2062_v8  ;;  %v458_v14 = vpack.c.bf16 %v450_v13, %v450_v13  ;;  %v466_v16 = vld [vmem:[%s2419_s11 + $0x8] sm:$0xff]  ;;  %v465_v38 = vld [vmem:[%s2419_s11] sm:$0xff]  ;;  %v457_v42 = vpack.c.bf16 %v449_v37, %v449_v37  ;;  %v468_v44 = vld [vmem:[%s2419_s11 + $0x18] sm:$0xff]  ;;  %v460_v48 = vpack.c.bf16 %v452_v41, %v452_v41  ;;  %vm1502_vm5 = vcmask 1044480   ;;  %s2287_s19 = smov 32   ;;  %s1956_s7 = sshll.u32 %s2266_s21, 3 }
  0x19   : > { %v474_v17 = vld [vmem:[%s2419_s11 + $0x48] sm:$0xf]  ;;  %v473_v39 = vld [vmem:[%s2419_s11 + $0x40] sm:$0xf]  ;;  %v476_v45 = vld [vmem:[%s2419_s11 + $0x58] sm:$0xf] }
  0x1a   : > { %v482_v19 = vpack.c.bf16 %v474_v17, %v466_v16  ;;  %1161 = vmatprep.mubr.bf16.mxu0 %v458_v14  ;;  %v481_v43 = vpack.c.bf16 %v473_v39, %v465_v38  ;;  %v484_v49 = vpack.c.bf16 %v476_v45, %v468_v44  ;;  %v2106_v51 = vld [vmem:[%s2855_s2 + $0x124] ss:$8 sps:$4 sm:$0xff]   ;;  %v2104_v52 = vld [vmem:[%s2855_s2 + $0x120] ss:$8 sps:$4 sm:$0xff]   ;;  %v2109_v53 = vld [vmem:[%s2855_s2 + $0x134] ss:$8 sps:$4 sm:$0xff]  }
  0x1b   : > { %1138 = vmatpush1.bf16.msra.mxu0 %v2064_v9  ;;  %1302 = vmatpush1.bf16.msra.mxu1 %v2064_v9  ;;  %v2107_v54 = vld [vmem:[%s2855_s2 + $0x130] ss:$8 sps:$4 sm:$0xff]   ;;  %v2112_v55 = vld [vmem:[%s2855_s2 + $0x144] ss:$8 sps:$4 sm:$0xff]   ;;  %v2110_v56 = vld [vmem:[%s2855_s2 + $0x140] ss:$8 sps:$4 sm:$0xff]  }
  0x1c   : > { %1139 = vmatprep.subr.bf16.mxu0 %v2065_v10  ;;  %1303 = vmatprep.subr.bf16.mxu1 %v2065_v10  ;;  %v2115_v57 = vld [vmem:[%s2855_s2 + $0x154] ss:$8 sps:$4 sm:$0xff]   ;;  %v2113_v58 = vld [vmem:[%s2855_s2 + $0x150] ss:$8 sps:$4 sm:$0xff]   ;;  %v2118_v59 = vld [vmem:[%s2855_s2 + $0x164] ss:$8 sps:$4 sm:$0xff]  }
  0x1d   : > { %1325 = vmatprep.mubr.bf16.mxu1 %v482_v19  ;;  %v2116_v60 = vld [vmem:[%s2855_s2 + $0x160] ss:$8 sps:$4 sm:$0xff]   ;;  %v2121_v61 = vld [vmem:[%s2855_s2 + $0x174] ss:$8 sps:$4 sm:$0xff]   ;;  %v2119_v62 = vld [vmem:[%s2855_s2 + $0x170] ss:$8 sps:$4 sm:$0xff]  }
  0x1e   : > { %v2124_v63 = vld [vmem:[%s2855_s2 + $0x184] ss:$8 sps:$4 sm:$0xff]   ;;  %v2122_v0 = vld [vmem:[%s2855_s2 + $0x180] ss:$8 sps:$4 sm:$0xff]   ;;  %v2127_v1 = vld [vmem:[%s2855_s2 + $0x194] ss:$8 sps:$4 sm:$0xff]  }
  0x1f   : > { %1140 = vmatpush1.bf16.msra.mxu0 %v2067_v11  ;;  %1304 = vmatpush1.bf16.msra.mxu1 %v2067_v11  ;;  %v2125_v2 = vld [vmem:[%s2855_s2 + $0x190] ss:$8 sps:$4 sm:$0xff]   ;;  %v2130_v3 = vld [vmem:[%s2855_s2 + $0x1a4] ss:$8 sps:$4 sm:$0xff]   ;;  %v2128_v4 = vld [vmem:[%s2855_s2 + $0x1a0] ss:$8 sps:$4 sm:$0xff]  }
  0x20   : > { %1141 = vmatprep.subr.bf16.mxu0 %v2068_v12  ;;  %1305 = vmatprep.subr.bf16.mxu1 %v2068_v12  ;;  %v2133_v5 = vld [vmem:[%s2855_s2 + $0x1b4] ss:$8 sps:$4 sm:$0xff]   ;;  %v2131_v6 = vld [vmem:[%s2855_s2 + $0x1b0] ss:$8 sps:$4 sm:$0xff]   ;;  %v2136_v7 = vld [vmem:[%s2855_s2 + $0x1c4] ss:$8 sps:$4 sm:$0xff]  }
  0x21   : > { %v2134_v8 = vld [vmem:[%s2855_s2 + $0x1c0] ss:$8 sps:$4 sm:$0xff]   ;;  %v2139_v9 = vld [vmem:[%s2855_s2 + $0x1d4] ss:$8 sps:$4 sm:$0xff]   ;;  %v2137_v10 = vld [vmem:[%s2855_s2 + $0x1d0] ss:$8 sps:$4 sm:$0xff]  }
  0x22   : > { %v2142_v11 = vld [vmem:[%s2855_s2 + $0x1e4] ss:$8 sps:$4 sm:$0xff]   ;;  %v2140_v12 = vld [vmem:[%s2855_s2 + $0x1e0] ss:$8 sps:$4 sm:$0xff]   ;;  %v2145_v13 = vld [vmem:[%s2855_s2 + $0x1f4] ss:$8 sps:$4 sm:$0xff]  }
  0x23   : > { %1142 = vmatpush1.bf16.msra.mxu0 %v2070_v15  ;;  %1306 = vmatpush1.bf16.msra.mxu1 %v2070_v15  ;;  %v2143_v14 = vld [vmem:[%s2855_s2 + $0x1f0] ss:$8 sps:$4 sm:$0xff]   ;;  %v2166_v37 = vld [vmem:[%s2855_s2 + $0x264] ss:$8 sps:$4 sm:$0xff]   ;;  %v2164_v38 = vld [vmem:[%s2855_s2 + $0x260] ss:$8 sps:$4 sm:$0xff]  }
  0x24   : > { %1143 = vmatprep.subr.bf16.mxu0 %v2071_v18  ;;  %1307 = vmatprep.subr.bf16.mxu1 %v2071_v18  ;;  %v451_v15 = vld [vmem:[%s2408_s8 + $0x10] sm:$0xff]  ;;  %v2148_v18 = vld [vmem:[%s2855_s2 + $0x204] ss:$8 sps:$4 sm:$0xff]   ;;  %vm2288_vm6 = vmmov 0   ;;  %s1957_s9 = sadd.s32 4294967293, %s1956_s7  ;;  %vm1605_vm13 = vcmask 261120  }
  0x25   : > { %v467_v16 = vld [vmem:[%s2419_s11 + $0x10] sm:$0xff]  ;;  %v459_v19 = vpack.c.bf16 %v451_v15, %v451_v15  ;;  %v2172_v41 = vld [vmem:[%s2855_s2 + $0x284] ss:$8 sps:$4 sm:$0xff]   ;;  %s2289_s12 = smov 122   ;;  %s2290_s13 = smov 125   ;;  %vm1702_vm14 = vcmask 23552  }
  0x26   : > { %v475_v17 = vld [vmem:[%s2419_s11 + $0x50] sm:$0xf]  ;;  %v2169_v39 = vld [vmem:[%s2855_s2 + $0x274] ss:$8 sps:$4 sm:$0xff]   ;;  %v2178_v45 = vld [vmem:[%s2855_s2 + $0x2a4] ss:$8 sps:$4 sm:$0xff]  }
  0x27   : > { %1144 = vmatpush1.bf16.msra.mxu0 %v2073_v20  ;;  %1308 = vmatpush1.bf16.msra.mxu1 %v2073_v20  ;;  %v483_v20 = vpack.c.bf16 %v475_v17, %v467_v16  ;;  %v2173_v44 = vld [vmem:[%s2855_s2 + $0x290] ss:$8 sps:$4 sm:$0xff]   ;;  %v2214_v15 = vld [vmem:[%s2855_s2 + $0x364] ss:$8 sps:$4 sm:$0xff]   ;;  %v2212_v16 = vld [vmem:[%s2855_s2 + $0x360] ss:$8 sps:$4 sm:$0xff]  }
  0x28   : > { %1145 = vmatprep.subr.bf16.mxu0 %v2074_v21  ;;  %1309 = vmatprep.subr.bf16.mxu1 %v2074_v21  ;;  %v454_v21 = vld [vmem:[%s2408_s8 + $0x28] sm:$0xff]  ;;  %v2217_v17 = vld [vmem:[%s2855_s2 + $0x374] ss:$8 sps:$4 sm:$0xff]   ;;  %s2291_s15 = smov 116   ;;  %s2292_s16 = smov 119  }
  0x29   : > { %s2293_s17 = smov 110   ;;  %s2294_s18 = smov 113  }
  0x2b   : > { %1146 = vmatpush1.bf16.msra.mxu0 %v2076_v22  ;;  %1310 = vmatpush1.bf16.msra.mxu1 %v2076_v22  ;;  %v470_v22 = vld [vmem:[%s2419_s11 + $0x28] sm:$0xff] }
  0x2c   : > { %1147 = vmatprep.subr.bf16.mxu0 %v2077_v23  ;;  %1311 = vmatprep.subr.bf16.mxu1 %v2077_v23  ;;  %v478_v23 = vld [vmem:[%s2419_s11 + $0x68] sm:$0xf] }
  0x2f   : > { %1148 = vmatpush1.bf16.msra.mxu0 %v2079_v24  ;;  %1312 = vmatpush1.bf16.msra.mxu1 %v2079_v24  ;;  %v2146_v24 = vld [vmem:[%s2855_s2 + $0x200] ss:$8 sps:$4 sm:$0xff]  }
  0x30   : > { %1149 = vmatprep.subr.bf16.mxu0 %v2080_v25  ;;  %1313 = vmatprep.subr.bf16.mxu1 %v2080_v25  ;;  %v2151_v25 = vld [vmem:[%s2855_s2 + $0x214] ss:$8 sps:$4 sm:$0xff]  }
  0x33   : > { %1150 = vmatpush1.bf16.msra.mxu0 %v2082_v26  ;;  %1314 = vmatpush1.bf16.msra.mxu1 %v2082_v26  ;;  %v462_v26 = vpack.c.bf16 %v454_v21, %v454_v21  ;;  %v2223_v21 = vld [vmem:[%s2855_s2 + $0x394] ss:$8 sps:$4 sm:$0xff]  }
  0x34   : > { %1151 = vmatprep.subr.bf16.mxu0 %v2083_v27  ;;  %1315 = vmatprep.subr.bf16.mxu1 %v2083_v27  ;;  %v486_v27 = vpack.c.bf16 %v478_v23, %v470_v22  ;;  %v2221_v22 = vld [vmem:[%s2855_s2 + $0x390] ss:$8 sps:$4 sm:$0xff]   ;;  %v2226_v23 = vld [vmem:[%s2855_s2 + $0x3a4] ss:$8 sps:$4 sm:$0xff]  }
  0x37   : > { %1152 = vmatpush1.bf16.msra.mxu0 %v2085_v28  ;;  %1316 = vmatpush1.bf16.msra.mxu1 %v2085_v28  ;;  %v2149_v28 = vld [vmem:[%s2855_s2 + $0x210] ss:$8 sps:$4 sm:$0xff]  }
  0x38   : > { %1153 = vmatprep.subr.bf16.mxu0 %v2086_v29  ;;  %1317 = vmatprep.subr.bf16.mxu1 %v2086_v29  ;;  %v2154_v29 = vld [vmem:[%s2855_s2 + $0x224] ss:$8 sps:$4 sm:$0xff]  }
  0x3b   : > { %1154 = vmatpush1.bf16.msra.mxu0 %v2088_v30  ;;  %1318 = vmatpush1.bf16.msra.mxu1 %v2088_v30  ;;  %v2152_v30 = vld [vmem:[%s2855_s2 + $0x220] ss:$8 sps:$4 sm:$0xff]  }
  0x3c   : > { %1155 = vmatprep.subr.bf16.mxu0 %v2089_v31  ;;  %1319 = vmatprep.subr.bf16.mxu1 %v2089_v31  ;;  %v2157_v31 = vld [vmem:[%s2855_s2 + $0x234] ss:$8 sps:$4 sm:$0xff]  }
  0x3f   : > { %1156 = vmatpush1.bf16.msra.mxu0 %v2091_v32  ;;  %1320 = vmatpush1.bf16.msra.mxu1 %v2091_v32  ;;  %v2155_v32 = vld [vmem:[%s2855_s2 + $0x230] ss:$8 sps:$4 sm:$0xff]  }
  0x40   : > { %1157 = vmatprep.subr.bf16.mxu0 %v2092_v33  ;;  %1321 = vmatprep.subr.bf16.mxu1 %v2092_v33  ;;  %v2160_v33 = vld [vmem:[%s2855_s2 + $0x244] ss:$8 sps:$4 sm:$0xff]  }
  0x43   : > { %1158 = vmatpush1.bf16.msra.mxu0 %v2094_v34  ;;  %1322 = vmatpush1.bf16.msra.mxu1 %v2094_v34  ;;  %v2158_v34 = vld [vmem:[%s2855_s2 + $0x240] ss:$8 sps:$4 sm:$0xff]  }
  0x44   : > { %1159 = vmatprep.subr.bf16.mxu0 %v2095_v35  ;;  %1323 = vmatprep.subr.bf16.mxu1 %v2095_v35  ;;  %v2163_v35 = vld [vmem:[%s2855_s2 + $0x254] ss:$8 sps:$4 sm:$0xff]  }
  0x47   : > { %1160 = vmatpush1.bf16.msra.mxu0 %v2097_v36  ;;  %1324 = vmatpush1.bf16.msra.mxu1 %v2097_v36  ;;  %v2161_v36 = vld [vmem:[%s2855_s2 + $0x250] ss:$8 sps:$4 sm:$0xff]  }
  0x48   : > { %1170 = vmatprep.subr.bf16.mxu0 %v2100_v40  ;;  %1336 = vmatprep.subr.bf16.mxu1 %v2100_v40  ;;  %v2167_v40 = vld [vmem:[%s2855_s2 + $0x270] ss:$8 sps:$4 sm:$0xff]  }
  0x4a   : > { %1162 = vmatmul.mubr.bf16.vlgmr.msra.gmra.mrb[0].mxu0 %v457_v42  ;;  %1326 = vmatmul.mubr.bf16.vlgmr.msra.gmra.mrb[0].mxu1 %v481_v43  ;;  %v2170_v42 = vld [vmem:[%s2855_s2 + $0x280] ss:$8 sps:$4 sm:$0xff]   ;;  %v2175_v43 = vld [vmem:[%s2855_s2 + $0x294] ss:$8 sps:$4 sm:$0xff]  }
  0x4b   : > { %1171 = vmatpush1.bf16.msra.mxu0 %v2098_v46  ;;  %1337 = vmatpush1.bf16.msra.mxu1 %v2098_v46  ;;  %v2176_v46 = vld [vmem:[%s2855_s2 + $0x2a0] ss:$8 sps:$4 sm:$0xff]  }
  0x4c   : > { %1172 = vmatprep.subr.bf16.mxu0 %v2103_v47  ;;  %1338 = vmatprep.subr.bf16.mxu1 %v2103_v47  ;;  %v2181_v47 = vld [vmem:[%s2855_s2 + $0x2b4] ss:$8 sps:$4 sm:$0xff]  }
  0x4d   : > { %1202 = vmatprep.mubr.bf16.mxu0 %v460_v48  ;;  %1368 = vmatprep.mubr.bf16.mxu1 %v484_v49  ;;  %v2179_v48 = vld [vmem:[%s2855_s2 + $0x2b0] ss:$8 sps:$4 sm:$0xff]   ;;  %v2184_v49 = vld [vmem:[%s2855_s2 + $0x2c4] ss:$8 sps:$4 sm:$0xff]  }
  0x4f   : > { %1173 = vmatpush1.bf16.msra.mxu0 %v2101_v50  ;;  %1339 = vmatpush1.bf16.msra.mxu1 %v2101_v50  ;;  %v2182_v50 = vld [vmem:[%s2855_s2 + $0x2c0] ss:$8 sps:$4 sm:$0xff]  }
  0x50   : > { %1174 = vmatprep.subr.bf16.mxu0 %v2106_v51  ;;  %1340 = vmatprep.subr.bf16.mxu1 %v2106_v51  ;;  %v2187_v51 = vld [vmem:[%s2855_s2 + $0x2d4] ss:$8 sps:$4 sm:$0xff]  }
  0x53   : > { %1175 = vmatpush1.bf16.msra.mxu0 %v2104_v52  ;;  %1341 = vmatpush1.bf16.msra.mxu1 %v2104_v52  ;;  %v2185_v52 = vld [vmem:[%s2855_s2 + $0x2d0] ss:$8 sps:$4 sm:$0xff]  }
  0x54   : > { %1176 = vmatprep.subr.bf16.mxu0 %v2109_v53  ;;  %1342 = vmatprep.subr.bf16.mxu1 %v2109_v53  ;;  %v2190_v53 = vld [vmem:[%s2855_s2 + $0x2e4] ss:$8 sps:$4 sm:$0xff]  }
  0x57   : > { %1177 = vmatpush1.bf16.msra.mxu0 %v2107_v54  ;;  %1343 = vmatpush1.bf16.msra.mxu1 %v2107_v54  ;;  %v2188_v54 = vld [vmem:[%s2855_s2 + $0x2e0] ss:$8 sps:$4 sm:$0xff]  }
  0x58   : > { %1178 = vmatprep.subr.bf16.mxu0 %v2112_v55  ;;  %1344 = vmatprep.subr.bf16.mxu1 %v2112_v55  ;;  %v2193_v55 = vld [vmem:[%s2855_s2 + $0x2f4] ss:$8 sps:$4 sm:$0xff]  }
  0x5b   : > { %1179 = vmatpush1.bf16.msra.mxu0 %v2110_v56  ;;  %1345 = vmatpush1.bf16.msra.mxu1 %v2110_v56  ;;  %v2191_v56 = vld [vmem:[%s2855_s2 + $0x2f0] ss:$8 sps:$4 sm:$0xff]  }
  0x5c   : > { %1180 = vmatprep.subr.bf16.mxu0 %v2115_v57  ;;  %1346 = vmatprep.subr.bf16.mxu1 %v2115_v57  ;;  %v453_v57 = vld [vmem:[%s2408_s8 + $0x20] sm:$0xff] }
  0x5f   : > { %1181 = vmatpush1.bf16.msra.mxu0 %v2113_v58  ;;  %1347 = vmatpush1.bf16.msra.mxu1 %v2113_v58  ;;  %v469_v58 = vld [vmem:[%s2419_s11 + $0x20] sm:$0xff] }
  0x60   : > { %1182 = vmatprep.subr.bf16.mxu0 %v2118_v59  ;;  %1348 = vmatprep.subr.bf16.mxu1 %v2118_v59  ;;  %v477_v59 = vld [vmem:[%s2419_s11 + $0x60] sm:$0xf] }
  0x63   : > { %1183 = vmatpush1.bf16.msra.mxu0 %v2116_v60  ;;  %1349 = vmatpush1.bf16.msra.mxu1 %v2116_v60  ;;  %v2196_v60 = vld [vmem:[%s2855_s2 + $0x304] ss:$8 sps:$4 sm:$0xff]  }
  0x64   : > { %1184 = vmatprep.subr.bf16.mxu0 %v2121_v61  ;;  %1350 = vmatprep.subr.bf16.mxu1 %v2121_v61  ;;  %v461_v61 = vpack.c.bf16 %v453_v57, %v453_v57 }
  0x67   : > { %1185 = vmatpush1.bf16.msra.mxu0 %v2119_v62  ;;  %1351 = vmatpush1.bf16.msra.mxu1 %v2119_v62  ;;  %v485_v62 = vpack.c.bf16 %v477_v59, %v469_v58 }
  0x68   : > { %1186 = vmatprep.subr.bf16.mxu0 %v2124_v63  ;;  %1352 = vmatprep.subr.bf16.mxu1 %v2124_v63  ;;  %v456_v63 = vld [vmem:[%s2408_s8 + $0x38] sm:$0xff] }
  0x6b   : > { %1187 = vmatpush1.bf16.msra.mxu0 %v2122_v0  ;;  %1353 = vmatpush1.bf16.msra.mxu1 %v2122_v0  ;;  %v472_v0 = vld [vmem:[%s2419_s11 + $0x38] sm:$0xff] }
  0x6c   : > { %1188 = vmatprep.subr.bf16.mxu0 %v2127_v1  ;;  %1354 = vmatprep.subr.bf16.mxu1 %v2127_v1  ;;  %v480_v1 = vld [vmem:[%s2419_s11 + $0x78] sm:$0xf] }
  0x6f   : > { %1189 = vmatpush1.bf16.msra.mxu0 %v2125_v2  ;;  %1355 = vmatpush1.bf16.msra.mxu1 %v2125_v2  ;;  %v2194_v2 = vld [vmem:[%s2855_s2 + $0x300] ss:$8 sps:$4 sm:$0xff]  }
  0x70   : > { %1190 = vmatprep.subr.bf16.mxu0 %v2130_v3  ;;  %1356 = vmatprep.subr.bf16.mxu1 %v2130_v3  ;;  %v2199_v3 = vld [vmem:[%s2855_s2 + $0x314] ss:$8 sps:$4 sm:$0xff]  }
  0x73   : > { %1191 = vmatpush1.bf16.msra.mxu0 %v2128_v4  ;;  %1357 = vmatpush1.bf16.msra.mxu1 %v2128_v4  ;;  %v464_v4 = vpack.c.bf16 %v456_v63, %v456_v63 }
  0x74   : > { %1192 = vmatprep.subr.bf16.mxu0 %v2133_v5  ;;  %1358 = vmatprep.subr.bf16.mxu1 %v2133_v5  ;;  %v488_v5 = vpack.c.bf16 %v480_v1, %v472_v0 }
  0x77   : > { %1193 = vmatpush1.bf16.msra.mxu0 %v2131_v6  ;;  %1359 = vmatpush1.bf16.msra.mxu1 %v2131_v6  ;;  %v2197_v6 = vld [vmem:[%s2855_s2 + $0x310] ss:$8 sps:$4 sm:$0xff]  }
  0x78   : > { %1194 = vmatprep.subr.bf16.mxu0 %v2136_v7  ;;  %1360 = vmatprep.subr.bf16.mxu1 %v2136_v7  ;;  %v2202_v7 = vld [vmem:[%s2855_s2 + $0x324] ss:$8 sps:$4 sm:$0xff]  }
  0x7b   : > { %1195 = vmatpush1.bf16.msra.mxu0 %v2134_v8  ;;  %1361 = vmatpush1.bf16.msra.mxu1 %v2134_v8  ;;  %v2200_v8 = vld [vmem:[%s2855_s2 + $0x320] ss:$8 sps:$4 sm:$0xff]  }
  0x7c   : > { %1196 = vmatprep.subr.bf16.mxu0 %v2139_v9  ;;  %1362 = vmatprep.subr.bf16.mxu1 %v2139_v9  ;;  %v2205_v9 = vld [vmem:[%s2855_s2 + $0x334] ss:$8 sps:$4 sm:$0xff]  }
  0x7f   : > { %1197 = vmatpush1.bf16.msra.mxu0 %v2137_v10  ;;  %1363 = vmatpush1.bf16.msra.mxu1 %v2137_v10  ;;  %v2203_v10 = vld [vmem:[%s2855_s2 + $0x330] ss:$8 sps:$4 sm:$0xff]  }
  0x80   : > { %1198 = vmatprep.subr.bf16.mxu0 %v2142_v11  ;;  %1364 = vmatprep.subr.bf16.mxu1 %v2142_v11  ;;  %v2208_v11 = vld [vmem:[%s2855_s2 + $0x344] ss:$8 sps:$4 sm:$0xff]  }
  0x83   : > { %1199 = vmatpush1.bf16.msra.mxu0 %v2140_v12  ;;  %1365 = vmatpush1.bf16.msra.mxu1 %v2140_v12  ;;  %v2206_v12 = vld [vmem:[%s2855_s2 + $0x340] ss:$8 sps:$4 sm:$0xff]  }
  0x84   : > { %1200 = vmatprep.subr.bf16.mxu0 %v2145_v13  ;;  %1366 = vmatprep.subr.bf16.mxu1 %v2145_v13  ;;  %v2211_v13 = vld [vmem:[%s2855_s2 + $0x354] ss:$8 sps:$4 sm:$0xff]  }
  0x87   : > { %1201 = vmatpush1.bf16.msra.mxu0 %v2143_v14  ;;  %1367 = vmatpush1.bf16.msra.mxu1 %v2143_v14  ;;  %v2209_v14 = vld [vmem:[%s2855_s2 + $0x350] ss:$8 sps:$4 sm:$0xff]  }
  0x88   : > { %1211 = vmatprep.subr.bf16.mxu0 %v2148_v18  ;;  %1379 = vmatprep.subr.bf16.mxu1 %v2148_v18  ;;  %v2215_v18 = vld [vmem:[%s2855_s2 + $0x370] ss:$8 sps:$4 sm:$0xff]  }
  0x8a   : > { %1203 = vmatmul.mubr.bf16.vlgmr.msra.gmra.mrb[0].mxu0 %v459_v19  ;;  %1369 = vmatmul.mubr.bf16.vlgmr.msra.gmra.mrb[0].mxu1 %v483_v20  ;;  %v2220_v19 = vld [vmem:[%s2855_s2 + $0x384] ss:$8 sps:$4 sm:$0xff]   ;;  %v2218_v20 = vld [vmem:[%s2855_s2 + $0x380] ss:$8 sps:$4 sm:$0xff]  }
  0x8b   : > { %1212 = vmatpush1.bf16.msra.mxu0 %v2146_v24  ;;  %1380 = vmatpush1.bf16.msra.mxu1 %v2146_v24  ;;  %v2224_v24 = vld [vmem:[%s2855_s2 + $0x3a0] ss:$8 sps:$4 sm:$0xff]  }
  0x8c   : > { %1213 = vmatprep.subr.bf16.mxu0 %v2151_v25  ;;  %1381 = vmatprep.subr.bf16.mxu1 %v2151_v25  ;;  %v2229_v25 = vld [vmem:[%s2855_s2 + $0x3b4] ss:$8 sps:$4 sm:$0xff]  }
  0x8d   : > { %1243 = vmatprep.mubr.bf16.mxu0 %v462_v26  ;;  %1411 = vmatprep.mubr.bf16.mxu1 %v486_v27  ;;  %v2227_v26 = vld [vmem:[%s2855_s2 + $0x3b0] ss:$8 sps:$4 sm:$0xff]   ;;  %v2232_v27 = vld [vmem:[%s2855_s2 + $0x3c4] ss:$8 sps:$4 sm:$0xff]  }
  0x8f   : > { %1214 = vmatpush1.bf16.msra.mxu0 %v2149_v28  ;;  %1382 = vmatpush1.bf16.msra.mxu1 %v2149_v28  ;;  %v2230_v28 = vld [vmem:[%s2855_s2 + $0x3c0] ss:$8 sps:$4 sm:$0xff]  }
  0x90   : > { %1215 = vmatprep.subr.bf16.mxu0 %v2154_v29  ;;  %1383 = vmatprep.subr.bf16.mxu1 %v2154_v29  ;;  %v2235_v29 = vld [vmem:[%s2855_s2 + $0x3d4] ss:$8 sps:$4 sm:$0xff]  }
  0x93   : > { %1216 = vmatpush1.bf16.msra.mxu0 %v2152_v30  ;;  %1384 = vmatpush1.bf16.msra.mxu1 %v2152_v30  ;;  %v2233_v30 = vld [vmem:[%s2855_s2 + $0x3d0] ss:$8 sps:$4 sm:$0xff]  }
  0x94   : > { %1217 = vmatprep.subr.bf16.mxu0 %v2157_v31  ;;  %1385 = vmatprep.subr.bf16.mxu1 %v2157_v31  ;;  %v2238_v31 = vld [vmem:[%s2855_s2 + $0x3e4] ss:$8 sps:$4 sm:$0xff]  }
  0x97   : > { %1218 = vmatpush1.bf16.msra.mxu0 %v2155_v32  ;;  %1386 = vmatpush1.bf16.msra.mxu1 %v2155_v32  ;;  %v2236_v32 = vld [vmem:[%s2855_s2 + $0x3e0] ss:$8 sps:$4 sm:$0xff]  }
  0x98   : > { %1219 = vmatprep.subr.bf16.mxu0 %v2160_v33  ;;  %1387 = vmatprep.subr.bf16.mxu1 %v2160_v33  ;;  %v2241_v33 = vld [vmem:[%s2855_s2 + $0x3f4] ss:$8 sps:$4 sm:$0xff]  }
  0x9b   : > { %1220 = vmatpush1.bf16.msra.mxu0 %v2158_v34  ;;  %1388 = vmatpush1.bf16.msra.mxu1 %v2158_v34  ;;  %v2239_v34 = vld [vmem:[%s2855_s2 + $0x3f0] ss:$8 sps:$4 sm:$0xff]  }
  0x9c   : > { %1221 = vmatprep.subr.bf16.mxu0 %v2163_v35  ;;  %1389 = vmatprep.subr.bf16.mxu1 %v2163_v35  ;;  %v455_v35 = vld [vmem:[%s2408_s8 + $0x30] sm:$0xff]  ;;  %s2284_s8 = smov 64  }
  0x9f   : > { %1222 = vmatpush1.bf16.msra.mxu0 %v2161_v36  ;;  %1390 = vmatpush1.bf16.msra.mxu1 %v2161_v36  ;;  %v471_v36 = vld [vmem:[%s2419_s11 + $0x30] sm:$0xff] }
  0xa0   : > { %1223 = vmatprep.subr.bf16.mxu0 %v2166_v37  ;;  %1391 = vmatprep.subr.bf16.mxu1 %v2166_v37  ;;  %v479_v37 = vld [vmem:[%s2419_s11 + $0x70] sm:$0xf]  ;;  %s2285_s11 = smov 96  }
  0xa3   : > { %1224 = vmatpush1.bf16.msra.mxu0 %v2164_v38  ;;  %1392 = vmatpush1.bf16.msra.mxu1 %v2164_v38  ;;  %v463_v38 = vpack.c.bf16 %v455_v35, %v455_v35 }
  0xa4   : > { %1225 = vmatprep.subr.bf16.mxu0 %v2169_v39  ;;  %1393 = vmatprep.subr.bf16.mxu1 %v2169_v39  ;;  %v487_v39 = vpack.c.bf16 %v479_v37, %v471_v36 }
  0xa7   : > { %1226 = vmatpush1.bf16.msra.mxu0 %v2167_v40  ;;  %1394 = vmatpush1.bf16.msra.mxu1 %v2167_v40 }
  0xa8   : > { %1227 = vmatprep.subr.bf16.mxu0 %v2172_v41  ;;  %1395 = vmatprep.subr.bf16.mxu1 %v2172_v41 }
  0xab   : > { %1228 = vmatpush1.bf16.msra.mxu0 %v2170_v42  ;;  %1396 = vmatpush1.bf16.msra.mxu1 %v2170_v42 }
  0xac   : > { %1229 = vmatprep.subr.bf16.mxu0 %v2175_v43  ;;  %1397 = vmatprep.subr.bf16.mxu1 %v2175_v43 }
  0xaf   : > { %1230 = vmatpush1.bf16.msra.mxu0 %v2173_v44  ;;  %1398 = vmatpush1.bf16.msra.mxu1 %v2173_v44 }
  0xb0   : > { %1231 = vmatprep.subr.bf16.mxu0 %v2178_v45  ;;  %1399 = vmatprep.subr.bf16.mxu1 %v2178_v45 }
  0xb3   : > { %1232 = vmatpush1.bf16.msra.mxu0 %v2176_v46  ;;  %1400 = vmatpush1.bf16.msra.mxu1 %v2176_v46 }
  0xb4   : > { %1233 = vmatprep.subr.bf16.mxu0 %v2181_v47  ;;  %1401 = vmatprep.subr.bf16.mxu1 %v2181_v47 }
  0xb7   : > { %1234 = vmatpush1.bf16.msra.mxu0 %v2179_v48  ;;  %1402 = vmatpush1.bf16.msra.mxu1 %v2179_v48 }
  0xb8   : > { %1235 = vmatprep.subr.bf16.mxu0 %v2184_v49  ;;  %1403 = vmatprep.subr.bf16.mxu1 %v2184_v49 }
  0xbb   : > { %1236 = vmatpush1.bf16.msra.mxu0 %v2182_v50  ;;  %1404 = vmatpush1.bf16.msra.mxu1 %v2182_v50 }
  0xbc   : > { %1237 = vmatprep.subr.bf16.mxu0 %v2187_v51  ;;  %1405 = vmatprep.subr.bf16.mxu1 %v2187_v51 }
  0xbf   : > { %1238 = vmatpush1.bf16.msra.mxu0 %v2185_v52  ;;  %1406 = vmatpush1.bf16.msra.mxu1 %v2185_v52 }
  0xc0   : > { %1239 = vmatprep.subr.bf16.mxu0 %v2190_v53  ;;  %1407 = vmatprep.subr.bf16.mxu1 %v2190_v53 }
  0xc3   : > { %1240 = vmatpush1.bf16.msra.mxu0 %v2188_v54  ;;  %1408 = vmatpush1.bf16.msra.mxu1 %v2188_v54 }
  0xc4   : > { %1241 = vmatprep.subr.bf16.mxu0 %v2193_v55  ;;  %1409 = vmatprep.subr.bf16.mxu1 %v2193_v55 }
  0xc7   : > { %1242 = vmatpush1.bf16.msra.mxu0 %v2191_v56  ;;  %1410 = vmatpush1.bf16.msra.mxu1 %v2191_v56 }
  0xc8   : > { %1252 = vmatprep.subr.bf16.mxu0 %v2196_v60  ;;  %1422 = vmatprep.subr.bf16.mxu1 %v2196_v60 }
  0xca   : > { %1244 = vmatmul.mubr.bf16.vlgmr.msra.gmra.mrb[0].mxu0 %v461_v61  ;;  %1412 = vmatmul.mubr.bf16.vlgmr.msra.gmra.mrb[0].mxu1 %v485_v62 }
  0xcb   : > { %1253 = vmatpush1.bf16.msra.mxu0 %v2194_v2  ;;  %1423 = vmatpush1.bf16.msra.mxu1 %v2194_v2 }
  0xcc   : > { %1254 = vmatprep.subr.bf16.mxu0 %v2199_v3  ;;  %1424 = vmatprep.subr.bf16.mxu1 %v2199_v3 }
  0xcd   : > { %1284 = vmatprep.mubr.bf16.mxu0 %v464_v4  ;;  %1454 = vmatprep.mubr.bf16.mxu1 %v488_v5 }
  0xcf   : > { %1255 = vmatpush1.bf16.msra.mxu0 %v2197_v6  ;;  %1425 = vmatpush1.bf16.msra.mxu1 %v2197_v6 }
  0xd0   : > { %1256 = vmatprep.subr.bf16.mxu0 %v2202_v7  ;;  %1426 = vmatprep.subr.bf16.mxu1 %v2202_v7 }
  0xd3   : > { %1257 = vmatpush1.bf16.msra.mxu0 %v2200_v8  ;;  %1427 = vmatpush1.bf16.msra.mxu1 %v2200_v8 }
  0xd4   : > { %1258 = vmatprep.subr.bf16.mxu0 %v2205_v9  ;;  %1428 = vmatprep.subr.bf16.mxu1 %v2205_v9 }
  0xd7   : > { %1259 = vmatpush1.bf16.msra.mxu0 %v2203_v10  ;;  %1429 = vmatpush1.bf16.msra.mxu1 %v2203_v10 }
  0xd8   : > { %1260 = vmatprep.subr.bf16.mxu0 %v2208_v11  ;;  %1430 = vmatprep.subr.bf16.mxu1 %v2208_v11 }
  0xdb   : > { %1261 = vmatpush1.bf16.msra.mxu0 %v2206_v12  ;;  %1431 = vmatpush1.bf16.msra.mxu1 %v2206_v12 }
  0xdc   : > { %1262 = vmatprep.subr.bf16.mxu0 %v2211_v13  ;;  %1432 = vmatprep.subr.bf16.mxu1 %v2211_v13 }
  0xdf   : > { %1263 = vmatpush1.bf16.msra.mxu0 %v2209_v14  ;;  %1433 = vmatpush1.bf16.msra.mxu1 %v2209_v14  ;;  %v2242_v14 = vld [vmem:[%s2857_s4] sm:$0xff]  }
  0xe0   : > { %1264 = vmatprep.subr.bf16.mxu0 %v2214_v15  ;;  %1434 = vmatprep.subr.bf16.mxu1 %v2214_v15  ;;  %v2286_v15 = vmov 0.0  }
  0xe3   : > { %1265 = vmatpush1.bf16.msra.mxu0 %v2212_v16  ;;  %1435 = vmatpush1.bf16.msra.mxu1 %v2212_v16 }
  0xe4   : > { %1266 = vmatprep.subr.bf16.mxu0 %v2217_v17  ;;  %1436 = vmatprep.subr.bf16.mxu1 %v2217_v17 }
  0xe7   : > { %1267 = vmatpush1.bf16.msra.mxu0 %v2215_v18  ;;  %1437 = vmatpush1.bf16.msra.mxu1 %v2215_v18  ;;  %v2243_v18 = vld [vmem:[%s2857_s4 + $0x8] sm:$0xff]  }
  0xe8   : > { %1268 = vmatprep.subr.bf16.mxu0 %v2220_v19  ;;  %1438 = vmatprep.subr.bf16.mxu1 %v2220_v19 }
  0xeb   : > { %1269 = vmatpush1.bf16.msra.mxu0 %v2218_v20  ;;  %1439 = vmatpush1.bf16.msra.mxu1 %v2218_v20 }
  0xec   : > { %1270 = vmatprep.subr.bf16.mxu0 %v2223_v21  ;;  %1440 = vmatprep.subr.bf16.mxu1 %v2223_v21  ;;  %v1570_v21 = vlaneseq }
  0xef   : > { %1271 = vmatpush1.bf16.msra.mxu0 %v2221_v22  ;;  %1441 = vmatpush1.bf16.msra.mxu1 %v2221_v22 }
  0xf0   : > { %1272 = vmatprep.subr.bf16.mxu0 %v2226_v23  ;;  %1442 = vmatprep.subr.bf16.mxu1 %v2226_v23 }
  0xf3   : > { %1273 = vmatpush1.bf16.msra.mxu0 %v2224_v24  ;;  %1443 = vmatpush1.bf16.msra.mxu1 %v2224_v24 }
  0xf4   : > { %1274 = vmatprep.subr.bf16.mxu0 %v2229_v25  ;;  %1444 = vmatprep.subr.bf16.mxu1 %v2229_v25  ;;  %v1571_v25 = vshrl.u32 %v1570_v21, 7 }
  0xf7   : > { %1275 = vmatpush1.bf16.msra.mxu0 %v2227_v26  ;;  %1445 = vmatpush1.bf16.msra.mxu1 %v2227_v26 }
  0xf8   : > { %1276 = vmatprep.subr.bf16.mxu0 %v2232_v27  ;;  %1446 = vmatprep.subr.bf16.mxu1 %v2232_v27 }
  0xfb   : > { %1277 = vmatpush1.bf16.msra.mxu0 %v2230_v28  ;;  %1447 = vmatpush1.bf16.msra.mxu1 %v2230_v28 }
  0xfc   : > { %1278 = vmatprep.subr.bf16.mxu0 %v2235_v29  ;;  %1448 = vmatprep.subr.bf16.mxu1 %v2235_v29 }
  0xff   : > { %1279 = vmatpush1.bf16.msra.mxu0 %v2233_v30  ;;  %1449 = vmatpush1.bf16.msra.mxu1 %v2233_v30 }
 0x100   : > { %1280 = vmatprep.subr.bf16.mxu0 %v2238_v31  ;;  %1450 = vmatprep.subr.bf16.mxu1 %v2238_v31 }
 0x103   : > { %1281 = vmatpush1.bf16.msra.mxu0 %v2236_v32  ;;  %1451 = vmatpush1.bf16.msra.mxu1 %v2236_v32  ;;  %v1572_v32 = vadd.s32 8, %v1571_v25 }
 0x104   : > { %1282 = vmatprep.subr.bf16.mxu0 %v2241_v33  ;;  %1452 = vmatprep.subr.bf16.mxu1 %v2241_v33 }
 0x107   : > { %1283 = vmatpush1.bf16.msra.mxu0 %v2239_v34  ;;  %1453 = vmatpush1.bf16.msra.mxu1 %v2239_v34  ;;  %v1573_v34 = vstv %s1957_s9 }
 0x108   : > { %1967 = vmatprep.subr.bf16.mxu0 %v2286_v15 }
 0x10a   : > { %1285 = vmatmul.mubr.bf16.vlgmr.msra.gmra.mrb[0].mxu0 %v463_v38  ;;  %1455 = vmatmul.mubr.bf16.vlgmr.msra.gmra.mrb[0].mxu1 %v487_v39  ;;  %v1575_v39 = vadd.s32 %v1573_v34, %v1572_v32 }
 0x10b   : > { %1968 = vmatpush3.bf16.msra.mxu0 %v2242_v14  ;;  %1971 = vmatprep.mubr.msk.bf16.mxu0 %vm2288_vm6, %v2286_v15 }
 0x10c   : > { %1969 = vmatprep.subr.bf16.mxu0 %v2286_v15  ;;  %vm1577_vm7 = vcmp.ge.s32.totalorder %v1575_v39, 0  ;;  %vm1579_vm8 = vcmp.lt.s32.totalorder %v1575_v39, 16 }
 0x10d   : > { %vm1581_vm11 = vmand %vm1577_vm7, %vm1579_vm8 }
 0x10f   : > { %1970 = vmatpush3.bf16.msra.mxu0 %v2243_v18 }
 0x1dd   : > { %v1286_v40 = vpop.f32.mrb[0].mxu0  ;;  %v1456_v41 = vpop.f32.mrb[0].mxu1 }
 0x1de   : > { %v1467_v42 = vrot.slane %v1286_v40, 2  ;;  %v1288_v43 = vpop.f32.mrb[1].mxu0  ;;  %v1458_v44 = vpop.f32.mrb[1].mxu1  ;;  %v1574_v40 = vadd.s32 %v1573_v34, %v1571_v25 }
 0x1df   : > { %v1468_v45 = vrot.slane %v1288_v43, 2  ;;  %v1290_v46 = vpop.f32.mrb[2].mxu0  ;;  %v1460_v47 = vpop.f32.mrb[2].mxu1  ;;  %v1955_v43 = vld [vmem:[%s2856_s3] ss:$0 sm:$0xff] }
 0x1e0   : > { %v2791_v48 = vsel %vm1471_vm0, %v1456_v41, %v1467_v42  ;;  %v1474_v49 = vsel %vm1471_vm0, %v1467_v42, %v1456_v41  ;;  %v1291_v50 = vpop.f32.mrb[3].mxu0  ;;  %v1462_v51 = vpop.f32.mrb[3].mxu1  ;;  %v1506_v10 = vrot.slane %v1460_v47, 3  ;;  %vm1576_vm9 = vcmp.ge.s32.totalorder %v1574_v40, 0 }
 0x1e1   : > { %v1473_v52 = vsel %vm1471_vm0, %v1458_v44, %v1468_v45  ;;  %v1475_v53 = vsel %vm1471_vm0, %v1468_v45, %v1458_v44  ;;  %v1523_v54 = vrot.slane %v1462_v51, 4  ;;  %v1533_v55 = vrot.slane %v1462_v51, 5 }
 0x1e2   : > { %v1520_v56 = vrot.slane %v1473_v52, 4  ;;  %v1521_v57 = vrot.slane %v1475_v53, 4  ;;  %v1530_v58 = vrot.slane %v1473_v52, 5  ;;  %v1531_v59 = vrot.slane %v1475_v53, 5 }
 0x1e3   : > { %v1544_v60 = vrot.slane %v1473_v52, 6  ;;  %v1545_v61 = vrot.slane %v1475_v53, 6  ;;  %v1547_v62 = vrot.slane %v1462_v51, 6  ;;  %v1491_v63 = vrot.slane %v1474_v49, 2 }
 0x1e4   : > { %v1490_v0 = vrot.slane %v2791_v48, 2  ;;  %v1480_v1 = vrot.slane %v1474_v49, 1  ;;  %v1534_v2 = vsel %vm1529_vm1, %v1531_v59, %v1533_v55  ;;  %v1479_v3 = vrot.slane %v2791_v48, 1 }
 0x1e5   : > { %1495 = vrot.lane.b32.xlu1 %v1491_v63, %s2284_s8  ;;  %v1532_v4 = vsel %vm1529_vm1, %v1530_v58, %v1531_v59  ;;  %v1548_v5 = vsel %vm1543_vm2, %v1545_v61, %v1547_v62  ;;  %v1546_v6 = vsel %vm1543_vm2, %v1544_v60, %v1545_v61  ;;  %v1524_v7 = vsel %vm1519_vm3, %v1521_v57, %v1523_v54 }
 0x1e6   : > { %1484 = vrot.lane.b32.xlu0 %v1480_v1, %s2285_s11  ;;  %v1522_v8 = vsel %vm1519_vm3, %v1520_v56, %v1521_v57  ;;  %v1504_v9 = vrot.slane %v1474_v49, 3  ;;  %v1492_v11 = vsel %vm1471_vm0, %v1490_v0, %v1491_v63  ;;  %v1503_v12 = vrot.slane %v2791_v48, 3 }
 0x1e7   : > { %v1481_v13 = vsel %vm1478_vm4, %v1479_v3, %v1480_v1  ;;  %vm1578_vm10 = vcmp.lt.s32.totalorder %v1574_v40, 16 }
 0x1e8   : > { %v1507_v16 = vsel %vm1502_vm5, %v1504_v9, %v1506_v10  ;;  %v1505_v17 = vsel %vm1502_vm5, %v1503_v12, %v1504_v9  ;;  %vm1580_vm12 = vmand %vm1576_vm9, %vm1578_vm10 }
 0x1e9   : > { %1493 = vrot.lane.b32.xlu1 %v1492_v11, %s2284_s8 }
 0x1ea   : > { %1482 = vrot.lane.b32.xlu0 %v1481_v13, %s2285_s11 }
 0x1ed   : > { %1510 = vrot.lane.b32.xlu1 %v1507_v16, %s2287_s19 }
 0x1ee   : > { %1508 = vrot.lane.b32.xlu0 %v1505_v17, %s2287_s19 }
 0x1f1   : > { %1537 = vrot.lane.b32.xlu1 %v1534_v2, %s2285_s11 }
 0x1f2   : > { %1535 = vrot.lane.b32.xlu0 %v1532_v4, %s2285_s11 }
 0x1f5   : > { %1551 = vrot.lane.b32.xlu1 %v1548_v5, %s2284_s8 }
 0x1f6   : > { %1549 = vrot.lane.b32.xlu0 %v1546_v6, %s2284_s8  ;;  %s1825_s8 = sshll.u32 %s2871_s22, 1 }
 0x1f7   : > { %s317_s11 = sadd.s32 %s1825_s8, %s2381_s14 }
 0x1f8   : > { %s1826_s28 = sshll.u32 %s317_s11, 3 }
 0x1f9   : > { %s319_s7 = scalar_lea.vmem %s2859_s6, %s1826_s28 }
 0x257   : > { %v1496_v19 = vpop.permute.xlu1 %1495 }
 0x258   : > { %v1485_v20 = vpop.permute.xlu0 %1484 }
 0x259   : > { %v1489_v22 = vadd.f32 %v1485_v20, %v1474_v49 }
 0x25b   : > { %v1494_v23 = vpop.permute.xlu1 %1493  ;;  %v1500_v27 = vadd.f32 %v1496_v19, %v1489_v22 }
 0x25c   : > { %v1483_v24 = vpop.permute.xlu0 %1482 }
 0x25d   : > { %v1488_v26 = vadd.f32 %v1483_v24, %v2791_v48  ;;  %v1961_v24 = vld [vmem:[%s2858_s5] ss:$0 sm:$0xff] }
 0x25f   : > { %v1511_v28 = vpop.permute.xlu1 %1510  ;;  %v1499_v29 = vadd.f32 %v1494_v23, %v1488_v26 }
 0x260   : > { %v1515_v30 = vadd.f32 %v1511_v28, %v1500_v27  ;;  %v1509_v31 = vpop.permute.xlu0 %1508 }
 0x261   : > { %v1514_v33 = vadd.f32 %v1509_v31, %v1499_v29 }
 0x262   : > { %v1528_v35 = vadd.f32 %v1524_v7, %v1515_v30 }
 0x263   : > { %v1538_v36 = vpop.permute.xlu1 %1537  ;;  %v1527_v37 = vadd.f32 %v1522_v8, %v1514_v33 }
 0x264   : > { %v1536_v38 = vpop.permute.xlu0 %1535  ;;  %v1542_v41 = vadd.f32 %v1538_v36, %v1528_v35 }
 0x265   : > { %v1541_v42 = vadd.f32 %v1536_v38, %v1527_v37 }
 0x267   : > { %v1552_v44 = vpop.permute.xlu1 %1551 }
 0x268   : > { %v1556_v45 = vadd.f32 %v1552_v44, %v1542_v41  ;;  %v1550_v46 = vpop.permute.xlu0 %1549 }
 0x269   : > { %v1555_v47 = vadd.f32 %v1550_v46, %v1541_v42 }
 0x26a   : > { %v1565_v48 = vadd.f32 %v1955_v43, %v1556_v45 }
 0x26b   : > { %v1564_v49 = vadd.f32 %v1955_v43, %v1555_v47 }
 0x26c   : > { %v1567_v50 = vmax.f32 %v1565_v48, 0.0 }
 0x26d   : > { %v1566_v51 = vmax.f32 %v1564_v49, 0.0 }
 0x26e   : > { %v1587_v52 = vsel %vm1581_vm11, %v1567_v50, 0.0 }
 0x26f   : > { %v1586_v53 = vsel %vm1580_vm12, %v1566_v51, 0.0 }
 0x270   : > { %v1588_v54 = vpack.c.bf16 %v1587_v52, %v1586_v53 }
 0x272   : > { %1972 = vmatmul.mubr.msk.bf16.vlgmr.msra.gmra.mrb[4].mxu0 %vm1605_vm13, %v1588_v54 }
 0x345   : > { %v1643_v55 = vpop.f32.mrb[4].mxu0 }
 0x346   : > { %v1973_v56 = vpop.f32.mrb[5].mxu0  ;;  %v1659_v58 = vrot.slane %v1643_v55, 2  ;;  %v1652_v59 = vrot.slane %v1643_v55, 1  ;;  %v1673_v60 = vrot.slane %v1643_v55, 4  ;;  %v1666_v61 = vrot.slane %v1643_v55, 3 }
 0x347   : > { %v1646_v57 = vpop.f32.mrb[6].mxu0  ;;  %v1687_v3 = vrot.slane %v1643_v55, 6  ;;  %v1680_v5 = vrot.slane %v1643_v55, 5 }
 0x348   : > { %v1974_v62 = vpop.f32.mrb[7].mxu0  ;;  %v1660_v63 = vrot.slane %v1646_v57, 2  ;;  %v1653_v0 = vrot.slane %v1646_v57, 1  ;;  %v1674_v1 = vrot.slane %v1646_v57, 4  ;;  %v1667_v2 = vrot.slane %v1646_v57, 3 }
 0x349   : > { %v1688_v4 = vrot.slane %v1646_v57, 6  ;;  %v1681_v6 = vrot.slane %v1646_v57, 5 }
 0x34a   : > { %v1661_v7 = vsel %vm1471_vm0, %v1659_v58, %v1660_v63  ;;  %v1654_v8 = vsel %vm1478_vm4, %v1652_v59, %v1653_v0  ;;  %v1675_v9 = vsel %vm1519_vm3, %v1673_v60, %v1674_v1  ;;  %v1668_v10 = vsel %vm1502_vm5, %v1666_v61, %v1667_v2 }
 0x34b   : > { %1662 = vrot.lane.b32.xlu1 %v1661_v7, %s2289_s12  ;;  %1655 = vrot.lane.b32.xlu0 %v1654_v8, %s2290_s13  ;;  %v1689_v11 = vsel %vm1543_vm2, %v1687_v3, %v1688_v4  ;;  %v1682_v12 = vsel %vm1529_vm1, %v1680_v5, %v1681_v6 }
 0x34f   : > { %1676 = vrot.lane.b32.xlu1 %v1675_v9, %s2291_s15  ;;  %1669 = vrot.lane.b32.xlu0 %v1668_v10, %s2292_s16 }
 0x353   : > { %1690 = vrot.lane.b32.xlu1 %v1689_v11, %s2293_s17  ;;  %1683 = vrot.lane.b32.xlu0 %v1682_v12, %s2294_s18 }
 0x3bd   : > { %v1663_v13 = vpop.permute.xlu1 %1662  ;;  %v1656_v14 = vpop.permute.xlu0 %1655 }
 0x3be   : > { %v1658_v15 = vadd.f32 %v1656_v14, %v1643_v55 }
 0x3c0   : > { %v1665_v16 = vadd.f32 %v1663_v13, %v1658_v15 }
 0x3c1   : > { %v1677_v17 = vpop.permute.xlu1 %1676  ;;  %v1670_v18 = vpop.permute.xlu0 %1669 }
 0x3c2   : > { %v1672_v19 = vadd.f32 %v1670_v18, %v1665_v16 }
 0x3c4   : > { %v1679_v20 = vadd.f32 %v1677_v17, %v1672_v19 }
 0x3c5   : > { %v1684_v21 = vpop.permute.xlu0 %1683  ;;  %v1691_v23 = vpop.permute.xlu1 %1690 }
 0x3c6   : > { %v1686_v22 = vadd.f32 %v1684_v21, %v1679_v20 }
 0x3c8   : > { %v1693_v25 = vadd.f32 %v1691_v23, %v1686_v22 }
 0x3ca   : > { %v1701_v26 = vadd.f32 %v1961_v24, %v1693_v25 }
 0x3cc   : > { %1703 = vst.msk [vmem:[%s319_s7] sm:$0xff] %vm1702_vm14, %v1701_v26 }
 0x3cd PF: > { %s16_s25 = sadd.s32 1, %s2282_s25   ;;  %s2860_s21 = smov %s2274_s23 }
 0x3ce   : > { %p13_p7 = scmp.ge.s32.totalorder %s16_s25, 6   ;;  %s2861_s22 = smov %s2278_s24 }
 0x3cf   : > { %s2862_s23 = smov %s2865_s26  ;;  %s2863_s24 = smov %s2869_s27 }
 0x3d0   :  { %15 = sbr.rel (!%p13_p7) target bundleno = 3 (0x3), region = 77 }

</bundles_post_ra>
